<compile_context>
chip_gen: v6e
topology: v6e:2x2x1
jax: 0.10.0
libtpu: 0.0.40
codegen_flags: <defaults>
</compile_context>

<pallas_src>
import jax
import jax.numpy as jnp
from jax.experimental import pallas as pl
from jax.experimental.pallas import tpu as pltpu


_LANES = 128
_SEED_MIX = 1000003  # odd multiplier: decorrelate per-tile hardware PRNG streams


def _cdiv(a, b):
    return -(-a // b)


def _round_up(x, m):
    return _cdiv(x, m) * m


def _sublane(dtype):
    # Native sublane multiple: 8 for 4-byte, 16 for 2-byte, 32 for 1-byte dtypes.
    return max(8, (8 * 4) // jnp.dtype(dtype).itemsize)


def _max_row_tile():
    # Generation-aware max block height (rows of 128 lanes).
    # 8192 rows = 4 MiB f32 block (v6e/v7x); 4096 rows = 2 MiB (v5e / unknown).
    try:
        kind = jax.devices()[0].device_kind.lower()
    except Exception:
        kind = ""
    if "v6" in kind or "v7" in kind:
        return 8192
    return 4096


def _reparam_prng_kernel(seed_ref, mu_ref, logvar_ref, out_ref):
    """Fast path (TPU hardware): draw eps with the on-chip PRNG."""
    # Fresh, decorrelated stream per grid step: hash program_id into the seed.
    pltpu.prng_seed(seed_ref[0], pl.program_id(0) * _SEED_MIX + 12345)
    eps = pltpu.stateful_normal(mu_ref.shape, jnp.float32)
    std = jnp.exp(0.5 * logvar_ref[...].astype(jnp.float32))
    out = eps * std + mu_ref[...].astype(jnp.float32)
    out_ref[...] = out.astype(out_ref.dtype)


def _reparam_eps_kernel(mu_ref, logvar_ref, eps_ref, out_ref):
    """Fallback path: eps supplied as an input (drawn outside the kernel)."""
    std = jnp.exp(0.5 * logvar_ref[...].astype(jnp.float32))
    out = eps_ref[...].astype(jnp.float32) * std + mu_ref[...].astype(jnp.float32)
    out_ref[...] = out.astype(out_ref.dtype)


def reparameterize(mu, logvar, sample_num=1, phase="training", seed=0):
    """Pallas equivalent of reparameterize.forward (training phase only).

    NOTE: like the PyTorch forward, `sample_num` is ignored and a single
    sample is returned.  Random values are not bit-reproducible across
    tile-size changes or between the TPU-PRNG and fallback paths.
    """
    if phase != "training":
        raise ValueError("Wrong phase. Always assume training phase.")

    orig_shape = mu.shape
    out_dtype = mu.dtype
    flat_n = int(mu.size)
    sublane = _sublane(out_dtype)

    # Lane-dense 2-D slab; pad only to the next lane multiple (never a full tile).
    padded_n = _round_up(max(flat_n, 1), _LANES)
    rows = padded_n // _LANES

    mu_flat = jnp.ravel(mu)
    lv_flat = jnp.ravel(logvar)
    if padded_n != flat_n:
        pad = padded_n - flat_n
        mu_flat = jnp.pad(mu_flat, (0, pad))
        lv_flat = jnp.pad(lv_flat, (0, pad))
    mu2 = mu_flat.reshape(rows, _LANES)
    lv2 = lv_flat.reshape(rows, _LANES)

    # Tile sizing: biggest block that fits, but split multi-tile inputs into an
    # even, balanced tile count so v7x's two TensorCores share the work.
    max_tile = _max_row_tile()
    n_target = _cdiv(rows, max_tile)
    if n_target > 1 and n_target % 2 == 1:
        n_target += 1
    tile_rows = min(max_tile, _round_up(_cdiv(rows, max(n_target, 1)), sublane))
    n_tiles = _cdiv(rows, tile_rows)

    block = (tile_rows, _LANES)
    out_shape = jax.ShapeDtypeStruct((rows, _LANES), out_dtype)

    itemsize = jnp.dtype(out_dtype).itemsize
    cost = pl.CostEstimate(
        flops=3 * padded_n,
        transcendentals=padded_n,
        bytes_accessed=3 * padded_n * itemsize,
    )
    compiler_params = pltpu.CompilerParams(
        dimension_semantics=("parallel",),
        vmem_limit_bytes=48 << 20,
    )

    if jax.default_backend() == "tpu":
        # Fast path: in-kernel hardware PRNG (no HBM traffic for eps).
        seed_arr = jnp.asarray([seed], dtype=jnp.int32)
        out2 = pl.pallas_call(
            _reparam_prng_kernel,
            out_shape=out_shape,
            grid_spec=pltpu.PrefetchScalarGridSpec(
                num_scalar_prefetch=1,  # seed lands in SMEM
                grid=(n_tiles,),
                in_specs=[
                    pl.BlockSpec(block, lambda i, s: (i, 0)),
                    pl.BlockSpec(block, lambda i, s: (i, 0)),
                ],
                out_specs=pl.BlockSpec(block, lambda i, s: (i, 0)),
            ),
            compiler_params=compiler_params,
            cost_estimate=cost,
        )(seed_arr, mu2, lv2)
    else:
        # Fallback (interpret / non-TPU): TPU PRNG primitives have no lowering
        # here, so pre-draw eps and fuse the rest in the kernel.
        eps2 = jax.random.normal(
            jax.random.PRNGKey(seed), (rows, _LANES), dtype=jnp.float32
        )
        out2 = pl.pallas_call(
            _reparam_eps_kernel,
            out_shape=out_shape,
            grid=(n_tiles,),
            in_specs=[
                pl.BlockSpec(block, lambda i: (i, 0)),
                pl.BlockSpec(block, lambda i: (i, 0)),
                pl.BlockSpec(block, lambda i: (i, 0)),
            ],
            out_specs=pl.BlockSpec(block, lambda i: (i, 0)),
            compiler_params=compiler_params,
            cost_estimate=cost,
        )(mu2, lv2, eps2)

    out_flat = out2.reshape(-1)
    if padded_n != flat_n:
        out_flat = out_flat[:flat_n]
    return out_flat.reshape(orig_shape)


if __name__ == "__main__":
    key = jax.random.PRNGKey(0)
    k_mu, k_lv = jax.random.split(key)

    # Small NCHW-shaped latents: batch=2, channels=4, spatial=16x16.
    mu = jax.random.normal(k_mu, (2, 4, 16, 16), dtype=jnp.float32)
    logvar = jax.random.normal(k_lv, (2, 4, 16, 16), dtype=jnp.float32) * 0.1

    out = reparameterize(mu, logvar, sample_num=1, phase="training", seed=1234)
    out = jax.block_until_ready(out)

    assert out.shape == mu.shape
    assert out.dtype == mu.dtype
    assert bool(jnp.all(jnp.isfinite(out)))

    # Sanity: residual (out - mu) / std should be ~N(0, 1).
    std = jnp.exp(0.5 * logvar)
    z = (out - mu) / std
    assert abs(float(jnp.mean(z))) < 0.25, float(jnp.mean(z))
    assert abs(float(jnp.std(z)) - 1.0) < 0.25, float(jnp.std(z))

    print("KERNEL_OK")
</pallas_src>

<mosaic_0001>
module attributes {stable_mosaic.version = 11 : i64} {
  func.func @_reparam_eps_kernel(%arg0: i32, %arg1: memref<16x128xf32, #tpu.memory_space<vmem>>, %arg2: memref<16x128xf32, #tpu.memory_space<vmem>>, %arg3: memref<16x128xf32, #tpu.memory_space<vmem>>, %arg4: memref<16x128xf32, #tpu.memory_space<vmem>>) attributes {dimension_semantics = [#tpu.dimension_semantics<parallel>], iteration_bounds = array<i64: 1>, scalar_prefetch = 0 : i64, scratch_operands = 0 : i64, tpu.core_type = #tpu.core_type<tc>, window_params = [{transform_indices = @transform_0, window_bounds = array<i64: 16, 128>}, {transform_indices = @transform_1, window_bounds = array<i64: 16, 128>}, {transform_indices = @transform_2, window_bounds = array<i64: 16, 128>}, {transform_indices = @transform_3, window_bounds = array<i64: 16, 128>}]} {
    %c0 = arith.constant 0 : index
    %c0_0 = arith.constant 0 : index
    %0 = vector.load %arg2[%c0, %c0_0] : memref<16x128xf32, #tpu.memory_space<vmem>>, vector<16x128xf32>
    %cst = arith.constant 5.000000e-01 : f32
    %1 = vector.broadcast %cst : f32 to vector<16x128xf32>
    %2 = arith.mulf %1, %0 : vector<16x128xf32>
    %3 = math.exp %2 : vector<16x128xf32>
    %c0_1 = arith.constant 0 : index
    %c0_2 = arith.constant 0 : index
    %4 = vector.load %arg3[%c0_1, %c0_2] : memref<16x128xf32, #tpu.memory_space<vmem>>, vector<16x128xf32>
    %5 = arith.mulf %4, %3 : vector<16x128xf32>
    %c0_3 = arith.constant 0 : index
    %c0_4 = arith.constant 0 : index
    %6 = vector.load %arg1[%c0_3, %c0_4] : memref<16x128xf32, #tpu.memory_space<vmem>>, vector<16x128xf32>
    %7 = arith.addf %5, %6 : vector<16x128xf32>
    %c0_5 = arith.constant 0 : index
    %c0_6 = arith.constant 0 : index
    %8 = vector.load %arg4[%c0_5, %c0_6] : memref<16x128xf32, #tpu.memory_space<vmem>>, vector<16x128xf32>
    tpu.vector_store %arg4[%c0_5, %c0_6], %7 {strides = array<i32>} : memref<16x128xf32, #tpu.memory_space<vmem>>, vector<16x128xf32>,
    return
  }
  func.func @transform_0(%arg0: i32) -> (i32, i32) {
    %c0_i32 = arith.constant 0 : i32
    %c0_i32_0 = arith.constant 0 : i32
    return %arg0, %c0_i32 : i32, i32
  }
  func.func @transform_1(%arg0: i32) -> (i32, i32) {
    %c0_i32 = arith.constant 0 : i32
    %c0_i32_0 = arith.constant 0 : i32
    return %arg0, %c0_i32 : i32, i32
  }
  func.func @transform_2(%arg0: i32) -> (i32, i32) {
    %c0_i32 = arith.constant 0 : i32
    %c0_i32_0 = arith.constant 0 : i32
    return %arg0, %c0_i32 : i32, i32
  }
  func.func @transform_3(%arg0: i32) -> (i32, i32) {
    %c0_i32 = arith.constant 0 : i32
    %c0_i32_0 = arith.constant 0 : i32
    return %arg0, %c0_i32 : i32, i32
  }
}

</mosaic_0001>

<bundles_post_ra>
// kernel: tpu_custom_call.1
= control target key start
LH: loop header
LB: loop body
LE: loop exit
PB: predicated region body
PF: predicated region fallthrough
CT: control target
= control target key end

     0   :  { %8 = vsyncpa [#allocation3], 0  ;;  %s238_s0 = inlined_call_operand.hbm [shape: f32[16,128], index: 0, kind: input, shape index: {}]   ;;  %s239_s1 = inlined_call_operand.hbm [shape: f32[16,128], index: 1, kind: input, shape index: {}]   ;;  %s240_s2 = inlined_call_operand.hbm [shape: f32[16,128], index: 2, kind: input, shape index: {}]   ;;  %s241_s3 = inlined_call_operand.hbm [shape: f32[16,128], index: 3, kind: output, shape index: {}]  }
   0x1   :  { %9 = vsyncpa [#allocation6], 0 }
   0x2   :  { %10 = vsyncpa [#allocation4], 0  ;;  %s188_s12 = smov [#allocation5]   ;;  %s189_s14 = smov [#allocation2]  }
   0x3   :  { %s28_s13 = sshll.u32 %s188_s12, 4  ;;  %s16_s15 = sshll.u32 %s189_s14, 4  ;;  %s29_s13 = int_to_ptr.vmem [resolvable:$true] %s28_s13  ;;  %s17_s15 = int_to_ptr.vmem [resolvable:$true] %s16_s15 }
   0x4   :  { %s110_s16 = scalar_lea.vmem %s29_s13, 256  ;;  %p115_p1 = scmp.lt.s32.totalorder %s29_s13, %s29_s13 }
   0x5   :  { %p111_p0 = scmp.ne.s32.totalorder %s29_s13, %s110_s16  ;;  %p116_p2 = scmp.lt.s32.totalorder %s110_s16, %s110_s16 }
   0x7   :  { %p117_p3 = por %p116_p2, %p115_p1 }
   0x9   :  { %p118_p4 = pnand %p117_p3, %p111_p0 }
   0xb   :  { %121 = shalt.err (!%p118_p4)
}
   0xc   :  { %s190_s17 = smov 128   ;;  %s191_s18 = smov 8  }
   0xd   :  { %34 = dma.hbm_to_vmem [thread:$0]  %s239_s1, 256, %s29_s13, [#allocation6], %s190_s17, %s190_s17, %s191_s18  }
   0xe   :  { %s130_s21 = scalar_lea.vmem %s17_s15, 256  ;;  %p135_p6 = scmp.lt.s32.totalorder %s17_s15, %s17_s15 }
   0xf   :  { %p131_p5 = scmp.ne.s32.totalorder %s17_s15, %s130_s21  ;;  %p136_p7 = scmp.lt.s32.totalorder %s130_s21, %s130_s21 }
  0x11   :  { %p137_p8 = por %p136_p7, %p135_p6 }
  0x13   :  { %p138_p9 = pnand %p137_p8, %p131_p5 }
  0x15   :  { %141 = shalt.err (!%p138_p9)
}
  0x16   :  { %22 = dma.hbm_to_vmem [thread:$0]  %s238_s0, 256, %s17_s15, [#allocation3], %s190_s17, %s190_s17, %s191_s18  }
  0x17   :  { %s192_s24 = smov [#allocation7]  }
  0x18   :  { %s40_s25 = sshll.u32 %s192_s24, 4  ;;  %s41_s25 = int_to_ptr.vmem [resolvable:$true] %s40_s25 }
  0x19   :  { %s150_s26 = scalar_lea.vmem %s41_s25, 256  ;;  %p155_p11 = scmp.lt.s32.totalorder %s41_s25, %s41_s25 }
  0x1a   :  { %p151_p10 = scmp.ne.s32.totalorder %s41_s25, %s150_s26  ;;  %p156_p12 = scmp.lt.s32.totalorder %s150_s26, %s150_s26 }
  0x1c   :  { %p157_p13 = por %p156_p12, %p155_p11 }
  0x1e   :  { %p158_p0 = pnand %p157_p13, %p151_p10 }
  0x20   :  { %161 = shalt.err (!%p158_p0)
}
  0x21   :  { %46 = dma.hbm_to_vmem [thread:$0]  %s240_s2, 256, %s41_s25, [#allocation6], %s190_s17, %s190_s17, %s191_s18  }
  0x22   :  { %182 = dma.done.wait [#allocation3], 256  }
  0x23   :  { %183 = vsyncadd [#allocation3], 4294967040 }
  0x24   :  { %184 = dma.done.wait [#allocation6], 512  }
  0x25   :  { %185 = vsyncadd [#allocation6], 4294966784  ;;  %v56_v0 = vld [vmem:[#allocation5] sm:$0xff]  ;;  %v57_v2 = vld [vmem:[#allocation5 + $0x8] sm:$0xff]  ;;  %s193_s0 = smov [#allocation8]  }
  0x26   :  { %v58_v1 = vmul.f32 0.5, %v56_v0  ;;  %v59_v3 = vmul.f32 0.5, %v57_v2  ;;  %v64_v6 = vld [vmem:[#allocation7] sm:$0xff]  ;;  %v65_v7 = vld [vmem:[#allocation7 + $0x8] sm:$0xff]  ;;  %s79_s2 = sshll.u32 %s193_s0, 4  ;;  %s80_s2 = int_to_ptr.vmem [resolvable:$true] %s79_s2 }
  0x27   :  { %v68_v9 = vld [vmem:[#allocation2] sm:$0xff]  ;;  %v69_v12 = vld [vmem:[#allocation2 + $0x8] sm:$0xff]  ;;  %s162_s28 = scalar_lea.vmem %s80_s2, 256  ;;  %p167_p2 = scmp.lt.s32.totalorder %s80_s2, %s80_s2 }
  0x28   :  { %v60_v4 = vmul.f32 1.442695, %v58_v1  ;;  %v62_v5 = vmul.f32 1.442695, %v59_v3  ;;  %p163_p1 = scmp.ne.s32.totalorder %s80_s2, %s162_s28  ;;  %p168_p3 = scmp.lt.s32.totalorder %s162_s28, %s162_s28 }
  0x2a   :  { %98 = vpow2.f32 %v60_v4  ;;  %p169_p4 = por %p168_p3, %p167_p2 }
  0x2b   :  { %100 = vpow2.f32 %v62_v5 }
  0x2c   :  { %p170_p5 = pnand %p169_p4, %p163_p1 }
  0x37   :  { %v99_v8 = vpop.eup %98 }
  0x38   :  { %v101_v10 = vpop.eup %100  ;;  %v66_v11 = vmul.f32 %v99_v8, %v64_v6 }
  0x39   :  { %v67_v13 = vmul.f32 %v101_v10, %v65_v7 }
  0x3a   :  { %v70_v14 = vadd.f32 %v68_v9, %v66_v11 }
  0x3b   :  { %v71_v15 = vadd.f32 %v69_v12, %v67_v13 }
  0x3c   :  { %72 = vst [vmem:[#allocation8] sm:$0xff] %v70_v14 }
  0x3d   :  { %73 = vst [vmem:[#allocation8 + $0x8] sm:$0xff] %v71_v15 }
  0x3e   :  { %173 = shalt.err (!%p170_p5)
}
  0x3f   :  { %85 = dma.vmem_to_hbm [thread:$0]  %s80_s2, 256, %s241_s3, [#allocation4], %s190_s17, %s190_s17, %s191_s18  }
  0x40   :  { %186 = dma.done.wait [#allocation4], 256  }
  0x41   :  { %187 = vsyncadd [#allocation4], 4294967040 }
  0x42   :  { %89 = vsyncpa [#allocation3], 1 }
  0x43   :  { %90 = vsyncpa [#allocation6], 1 }
  0x44   :  { %91 = vsyncpa [#allocation4], 1 }

</bundles_post_ra>
